<compile_context>
chip_gen: v7x
topology: tpu7x:2x2x1
jax: 0.10.0
libtpu: 0.0.40
codegen_flags: <defaults>
</compile_context>

<pallas_src>
import jax
import jax.numpy as jnp
from jax.experimental import pallas as pl
from jax.experimental.pallas import tpu as pltpu


def predictor_kernel(x_ref, w1_ref, b1_ref, w2_ref, b2_ref, logits_ref, px_ref):
    x = x_ref[...]                                                    # (TB, F)

    # fc1 (+ ReLU): (TB, F) @ (F, H) -> (TB, H)
    h = jnp.dot(x, w1_ref[...], preferred_element_type=jnp.float32) + b1_ref[...]
    h = jnp.maximum(h, 0.0)

    # fc2 -> logits: (TB, H) @ (H, C) -> (TB, C). No class-dim padding.
    logits = jnp.dot(h, w2_ref[...], preferred_element_type=jnp.float32) + b2_ref[...]
    logits_ref[...] = logits.astype(logits_ref.dtype)

    # Numerically stable softmax over the (unpadded) class axis; exact divide.
    m = jnp.max(logits, axis=-1, keepdims=True)
    e = jnp.exp(logits - m)
    denom = jnp.sum(e, axis=-1, keepdims=True)
    px_ref[...] = (e / denom).astype(px_ref.dtype)


def _pick_batch_tile(B, block_b):
    """Return (TB, Bp): TB a multiple of 8, preferably dividing B (no padding),
    and preferably giving >=2 grid steps (v7x megacore)."""
    if B <= 8:
        return 8, ((B + 7) // 8) * 8
    cap = min(block_b, B)
    if B >= 16:
        cap = min(cap, B // 2)          # keep at least 2 grid steps
    cap = max(8, (cap // 8) * 8)
    for t in range(cap, 7, -8):         # largest multiple of 8 dividing B
        if B % t == 0:
            return t, B
    nb = (B + cap - 1) // cap           # fallback: pad the batch
    return cap, nb * cap


def predictor_forward(x, w1, b1, w2, b2, *, block_b=2048):
    """x: (B, F); w1: (F, H); b1: (H,); w2: (H, C); b2: (C,). Returns (logits, px)."""
    B, F = x.shape
    H = w1.shape[1]
    C = w2.shape[1]

    # Biases as (1, dim) rows (free reshape; no padding of any kind).
    b1r = b1.reshape(1, H).astype(jnp.float32)
    b2r = b2.reshape(1, C).astype(jnp.float32)

    TB, Bp = _pick_batch_tile(B, block_b)
    nb = Bp // TB
    xp = x if Bp == B else jnp.zeros((Bp, F), x.dtype).at[:B].set(x)

    logits, px = pl.pallas_call(
        predictor_kernel,
        out_shape=(
            jax.ShapeDtypeStruct((Bp, C), jnp.float32),
            jax.ShapeDtypeStruct((Bp, C), jnp.float32),
        ),
        grid=(nb,),
        in_specs=[
            pl.BlockSpec((TB, F), lambda i: (i, 0)),   # x streams per batch tile
            pl.BlockSpec((F, H), lambda i: (0, 0)),    # weights stay VMEM-resident
            pl.BlockSpec((1, H), lambda i: (0, 0)),
            pl.BlockSpec((H, C), lambda i: (0, 0)),
            pl.BlockSpec((1, C), lambda i: (0, 0)),
        ],
        out_specs=(
            pl.BlockSpec((TB, C), lambda i: (i, 0)),   # narrow (C=2) unpadded writeback
            pl.BlockSpec((TB, C), lambda i: (i, 0)),
        ),
        compiler_params=pltpu.CompilerParams(dimension_semantics=("parallel",)),
    )(xp, w1.astype(jnp.float32), b1r, w2.astype(jnp.float32), b2r)

    if Bp != B:
        logits, px = logits[:B], px[:B]
    return logits, px


def init_params(key, in_features=16, num_classes=2):
    # Deterministic init mimicking PyTorch Linear default: U(-1/sqrt(fan_in), +1/sqrt(fan_in)).
    k1, k2, k3, k4 = jax.random.split(key, 4)
    bound1 = 1.0 / jnp.sqrt(in_features)
    w1 = jax.random.uniform(k1, (in_features, in_features), jnp.float32, -bound1, bound1)
    b1 = jax.random.uniform(k2, (in_features,), jnp.float32, -bound1, bound1)
    bound2 = 1.0 / jnp.sqrt(in_features)
    w2 = jax.random.uniform(k3, (in_features, num_classes), jnp.float32, -bound2, bound2)
    b2 = jax.random.uniform(k4, (num_classes,), jnp.float32, -bound2, bound2)
    return w1, b1, w2, b2


if __name__ == "__main__":
    key = jax.random.PRNGKey(0)
    kx, kp = jax.random.split(key)
    B, IN_F, NUM_CLASSES = 8, 16, 2
    x = jax.random.normal(kx, (B, IN_F), jnp.float32)
    w1, b1, w2, b2 = init_params(kp, IN_F, NUM_CLASSES)

    logits, px = predictor_forward(x, w1, b1, w2, b2)
    jax.block_until_ready((logits, px))

    # Reference check against plain JAX (exact softmax divide -> tight tolerance).
    h_ref = jnp.maximum(x @ w1 + b1, 0.0)
    logits_ref = h_ref @ w2 + b2
    px_ref = jax.nn.softmax(logits_ref, axis=1)
    assert logits.shape == (B, NUM_CLASSES) and px.shape == (B, NUM_CLASSES)
    assert jnp.allclose(logits, logits_ref, atol=1e-5, rtol=1e-5)
    assert jnp.allclose(px, px_ref, atol=1e-5, rtol=1e-5)
    assert bool(jnp.all(jnp.isfinite(px)))
    assert jnp.allclose(jnp.sum(px, axis=1), 1.0, atol=1e-5)

    # Secondary check: multi-step grid with a batch that tiles evenly (TB=8, 5 steps).
    x2 = jax.random.normal(jax.random.PRNGKey(1), (40, IN_F), jnp.float32)
    logits2, px2 = predictor_forward(x2, w1, b1, w2, b2)
    jax.block_until_ready((logits2, px2))
    lr2 = jnp.maximum(x2 @ w1 + b1, 0.0) @ w2 + b2
    assert jnp.allclose(logits2, lr2, atol=1e-5, rtol=1e-5)
    assert jnp.allclose(px2, jax.nn.softmax(lr2, axis=1), atol=1e-5, rtol=1e-5)

    print("KERNEL_OK")
</pallas_src>

<mosaic_0001>
module attributes {stable_mosaic.version = 11 : i64} {
  func.func @predictor_kernel(%arg0: i32, %arg1: memref<8x16xf32, #tpu.memory_space<vmem>>, %arg2: memref<16x16xf32, #tpu.memory_space<vmem>>, %arg3: memref<1x16xf32, #tpu.memory_space<vmem>>, %arg4: memref<16x2xf32, #tpu.memory_space<vmem>>, %arg5: memref<1x2xf32, #tpu.memory_space<vmem>>, %arg6: memref<8x2xf32, #tpu.memory_space<vmem>>, %arg7: memref<8x2xf32, #tpu.memory_space<vmem>>) attributes {dimension_semantics = [#tpu.dimension_semantics<parallel>], iteration_bounds = array<i64: 1>, scalar_prefetch = 0 : i64, scratch_operands = 0 : i64, tpu.core_type = #tpu.core_type<tc>, window_params = [{transform_indices = @transform_0, window_bounds = array<i64: 8, 16>}, {pipeline_mode = #tpu.pipeline_mode<synchronous>, transform_indices = @transform_1, window_bounds = array<i64: 16, 16>}, {pipeline_mode = #tpu.pipeline_mode<synchronous>, transform_indices = @transform_2, window_bounds = array<i64: 1, 16>}, {pipeline_mode = #tpu.pipeline_mode<synchronous>, transform_indices = @transform_3, window_bounds = array<i64: 16, 2>}, {pipeline_mode = #tpu.pipeline_mode<synchronous>, transform_indices = @transform_4, window_bounds = array<i64: 1, 2>}, {transform_indices = @transform_5, window_bounds = array<i64: 8, 2>}, {transform_indices = @transform_6, window_bounds = array<i64: 8, 2>}]} {
    %c0 = arith.constant 0 : index
    %c0_0 = arith.constant 0 : index
    %0 = vector.load %arg1[%c0, %c0_0] : memref<8x16xf32, #tpu.memory_space<vmem>>, vector<8x16xf32>
    %c0_1 = arith.constant 0 : index
    %c0_2 = arith.constant 0 : index
    %1 = vector.load %arg2[%c0_1, %c0_2] : memref<16x16xf32, #tpu.memory_space<vmem>>, vector<16x16xf32>
    %cst = arith.constant dense<0.000000e+00> : vector<8x16xf32>
    %2 = tpu.matmul %0, %1, %cst {dimension_numbers = #tpu.dot_dimension_numbers<[1], [0], [0], [1], [0, 0, 1, 1], [], []>} : vector<8x16xf32>, vector<16x16xf32>, vector<8x16xf32> -> vector<8x16xf32>
    %c0_3 = arith.constant 0 : index
    %c0_4 = arith.constant 0 : index
    %3 = vector.load %arg3[%c0_3, %c0_4] : memref<1x16xf32, #tpu.memory_space<vmem>>, vector<1x16xf32>
    %4 = vector.broadcast %3 : vector<1x16xf32> to vector<8x16xf32>
    %5 = arith.addf %2, %4 : vector<8x16xf32>
    %cst_5 = arith.constant 0.000000e+00 : f32
    %6 = vector.broadcast %cst_5 : f32 to vector<8x16xf32>
    %7 = arith.maximumf %5, %6 : vector<8x16xf32>
    %c0_6 = arith.constant 0 : index
    %c0_7 = arith.constant 0 : index
    %8 = vector.load %arg4[%c0_6, %c0_7] : memref<16x2xf32, #tpu.memory_space<vmem>>, vector<16x2xf32>
    %cst_8 = arith.constant dense<0.000000e+00> : vector<8x2xf32>
    %9 = tpu.matmul %7, %8, %cst_8 {dimension_numbers = #tpu.dot_dimension_numbers<[1], [0], [0], [1], [0, 0, 1, 1], [], []>} : vector<8x16xf32>, vector<16x2xf32>, vector<8x2xf32> -> vector<8x2xf32>
    %c0_9 = arith.constant 0 : index
    %c0_10 = arith.constant 0 : index
    %10 = vector.load %arg5[%c0_9, %c0_10] : memref<1x2xf32, #tpu.memory_space<vmem>>, vector<1x2xf32>
    %11 = vector.broadcast %10 : vector<1x2xf32> to vector<8x2xf32>
    %12 = arith.addf %9, %11 : vector<8x2xf32>
    %c0_11 = arith.constant 0 : index
    %c0_12 = arith.constant 0 : index
    %13 = vector.load %arg6[%c0_11, %c0_12] : memref<8x2xf32, #tpu.memory_space<vmem>>, vector<8x2xf32>
    tpu.vector_store %arg6[%c0_11, %c0_12], %12 {strides = array<i32>} : memref<8x2xf32, #tpu.memory_space<vmem>>, vector<8x2xf32>,
    %cst_13 = arith.constant dense<0xFF800000> : vector<8xf32>
    %14 = vector.multi_reduction <maximumf>, %12, %cst_13 [1] : vector<8x2xf32> to vector<8xf32>
    %15 = vector.shape_cast %14 : vector<8xf32> to vector<8x1xf32>
    %16 = vector.broadcast %15 : vector<8x1xf32> to vector<8x2xf32>
    %17 = arith.subf %12, %16 : vector<8x2xf32>
    %18 = math.exp %17 : vector<8x2xf32>
    %cst_14 = arith.constant dense<0.000000e+00> : vector<8xf32>
    %19 = vector.multi_reduction <add>, %18, %cst_14 [1] : vector<8x2xf32> to vector<8xf32>
    %20 = vector.shape_cast %19 : vector<8xf32> to vector<8x1xf32>
    %21 = vector.broadcast %20 : vector<8x1xf32> to vector<8x2xf32>
    %22 = arith.divf %18, %21 : vector<8x2xf32>
    %c0_15 = arith.constant 0 : index
    %c0_16 = arith.constant 0 : index
    %23 = vector.load %arg7[%c0_15, %c0_16] : memref<8x2xf32, #tpu.memory_space<vmem>>, vector<8x2xf32>
    tpu.vector_store %arg7[%c0_15, %c0_16], %22 {strides = array<i32>} : memref<8x2xf32, #tpu.memory_space<vmem>>, vector<8x2xf32>,
    return
  }
  func.func @transform_0(%arg0: i32) -> (i32, i32) {
    %c0_i32 = arith.constant 0 : i32
    %c0_i32_0 = arith.constant 0 : i32
    return %arg0, %c0_i32 : i32, i32
  }
  func.func @transform_1(%arg0: i32) -> (i32, i32) {
    %c0_i32 = arith.constant 0 : i32
    %c0_i32_0 = arith.constant 0 : i32
    %c0_i32_1 = arith.constant 0 : i32
    return %c0_i32, %c0_i32_0 : i32, i32
  }
  func.func @transform_2(%arg0: i32) -> (i32, i32) {
    %c0_i32 = arith.constant 0 : i32
    %c0_i32_0 = arith.constant 0 : i32
    %c0_i32_1 = arith.constant 0 : i32
    return %c0_i32, %c0_i32_0 : i32, i32
  }
  func.func @transform_3(%arg0: i32) -> (i32, i32) {
    %c0_i32 = arith.constant 0 : i32
    %c0_i32_0 = arith.constant 0 : i32
    %c0_i32_1 = arith.constant 0 : i32
    return %c0_i32, %c0_i32_0 : i32, i32
  }
  func.func @transform_4(%arg0: i32) -> (i32, i32) {
    %c0_i32 = arith.constant 0 : i32
    %c0_i32_0 = arith.constant 0 : i32
    %c0_i32_1 = arith.constant 0 : i32
    return %c0_i32, %c0_i32_0 : i32, i32
  }
  func.func @transform_5(%arg0: i32) -> (i32, i32) {
    %c0_i32 = arith.constant 0 : i32
    %c0_i32_0 = arith.constant 0 : i32
    return %arg0, %c0_i32 : i32, i32
  }
  func.func @transform_6(%arg0: i32) -> (i32, i32) {
    %c0_i32 = arith.constant 0 : i32
    %c0_i32_0 = arith.constant 0 : i32
    return %arg0, %c0_i32 : i32, i32
  }
}

</mosaic_0001>

<bundles_post_ra>
// kernel: tpu_custom_call.1
= control target key start
LH: loop header
LB: loop body
LE: loop exit
PB: predicated region body
PF: predicated region fallthrough
CT: control target
= control target key end

     0   :  { %12 = vsyncpa [#allocation3], 0  ;;  %s286_s21 = smov [#allocation2]   ;;  %s365_s0 = inlined_call_operand.hbm [shape: f32[8,16], index: 0, kind: input, shape index: {}]   ;;  %s366_s1 = inlined_call_operand.vmem [shape: f32[16,16], index: 1, kind: input, shape index: {}]   ;;  %s367_s2 = inlined_call_operand.vmem [shape: f32[1,16], index: 2, kind: input, shape index: {}]   ;;  %s368_s3 = inlined_call_operand.vmem [shape: f32[16,2], index: 3, kind: input, shape index: {}]   ;;  %s369_s4 = inlined_call_operand.vmem [shape: f32[1,2], index: 4, kind: input, shape index: {}]   ;;  %s370_s5 = inlined_call_operand.vmem [shape: f32[8,2], index: 5, kind: output, shape index: {0}]   ;;  %s371_s6 = inlined_call_operand.vmem [shape: f32[8,2], index: 6, kind: output, shape index: {1}]  }
   0x1   :  { %s19_s22 = sshll.u32 %s286_s21, 4  ;;  %s262_s25 = scalar_lea.hbm %s365_s0, 128  ;;  %s20_s22 = int_to_ptr.vmem [resolvable:$true] %s19_s22 }
   0x2   :  { %p263_p0 = scmp.ne.s32.totalorder %s365_s0, %s262_s25  ;;  %p266_p1 = scmp.lt.u32.totalorder %s262_s25, %s365_s0 }
   0x4   :  { %p268_p2 = pnand %p266_p1, %p263_p0 }
   0x6   :  { %271 = shalt.err (!%p268_p2)
}
   0x7   :  { %s272_s30 = scalar_lea.vmem %s20_s22, 128  ;;  %p277_p4 = scmp.lt.s32.totalorder %s20_s22, %s20_s22 }
   0x8   :  { %p273_p3 = scmp.ne.s32.totalorder %s20_s22, %s272_s30  ;;  %p278_p5 = scmp.lt.s32.totalorder %s272_s30, %s272_s30 }
   0xa   :  { %p279_p6 = por %p278_p5, %p277_p4 }
   0xc   :  { %p280_p7 = pnand %p279_p6, %p273_p3 }
   0xe   :  { %283 = shalt.err (!%p280_p7)
}
   0xf   :  { %22 = dma.hbm_to_vmem [thread:$0]  %s365_s0, 128, %s20_s22, [#allocation3]  }
  0x10   :  { %284 = dma.done.wait [#allocation3], 128  }
  0x11   :  { %285 = vsyncadd [#allocation3], 4294967168  ;;  %v287_v0 = vmov 0.0|0.0   ;;  %vm288_vm0 = vmmov 0   ;;  %v289_v1 = vmov 0.0   ;;  %v35_v2 = vld [vmem:[%s366_s1] sm:$0xff] }
  0x12   :  { %248 = vmatprep.subr.bf16.mxu0 %v287_v0  ;;  %238 = vmatprep.mubr.msk.f32.mxu0 %vm288_vm0, %v289_v1  ;;  %v36_v3 = vld [vmem:[%s366_s1 + $0x8] sm:$0xff]  ;;  %v34_v5 = vld [vmem:[#allocation2] sm:$0xff]  ;;  %vm44_vm1 = vcmask 130048   ;;  %vm201_vm2 = vcmask 15360  }
  0x13   :  { %251 = vmatprep.subr.bf16.mxu1 %v287_v0  ;;  %245 = vmatprep.mubr.msk.f32.mxu1 %vm288_vm0, %v289_v1  ;;  %v249_v4 = vpack.c.bf16 %v36_v3, %v35_v2  ;;  %v119_v6 = vld [vmem:[%s368_s3] sm:$0xff]  ;;  %v120_v7 = vld [vmem:[%s368_s3 + $0x8] sm:$0xff] }
  0x14   :  { %v252_v8 = vpack.c.bf16 %v120_v7, %v119_v6  ;;  %v224_v9 = vld [vmem:[%s367_s2] ss:$0 sm:$0xff] }
  0x15   :  { %250 = vmatpush3.bf16.msra.mxu0 %v249_v4  ;;  %v226_v14 = vld [vmem:[%s369_s4] ss:$0 sm:$0xff] }
  0x16   :  { %253 = vmatpush3.bf16.msra.mxu1 %v252_v8 }
  0x18   :  { %239 = vmatmul.mubr.msk.f32.vlgmr.msra.gmra.mrb[0].mxu0 %vm44_vm1, %v34_v5 }
  0xeb   :  { %v114_v10 = vpop.f32.mrb[0].mxu0 }
  0xec   :  { %v115_v11 = vadd.f32 %v224_v9, %v114_v10  ;;  %v240_v12 = vpop.f32.mrb[1].mxu0 }
  0xee   :  { %v118_v13 = vmax.f32 %v115_v11, 0.0 }
  0xf0   :  { %246 = vmatmul.mubr.msk.f32.vlgmr.msra.gmra.mrb[0].mxu1 %vm44_vm1, %v118_v13 }
 0x1c3   :  { %v197_v15 = vpop.f32.mrb[0].mxu1 }
 0x1c4   :  { %v198_v16 = vadd.f32 %v226_v14, %v197_v15  ;;  %v247_v17 = vpop.f32.mrb[1].mxu1 }
 0x1c6   :  { %v203_v18 = vsel %vm201_vm2, %v198_v16, -inf  ;;  %202 = vst.msk [vmem:[%s370_s5] sm:$0xff] %vm201_vm2, %v198_v16 }
 0x1c7   :  { %204 = vmax.xlane.f32.xlu0 %v203_v18 }
 0x254   :  { %v205_v19 = vpop.xlane.xlu0 %204 }
 0x255   :  { %v206_v20 = vsub.f32 %v198_v16, %v205_v19 }
 0x257   :  { %v207_v21 = vmul.f32 1.442695, %v206_v20 }
 0x259   :  { %258 = vpow2.f32 %v207_v21 }
 0x263   :  { %v259_v22 = vpop.eup %258 }
 0x264   :  { %v209_v23 = vsel %vm201_vm2, %v259_v22, 0.0 }
 0x265   :  { %210 = vadd.xlane.f32.xlu0 %v209_v23 }
 0x2f2   :  { %v211_v24 = vpop.xlane.xlu0 %210 }
 0x2f3   :  { %260 = vrcp.f32 %v211_v24 }
 0x2fd   :  { %v261_v25 = vpop.eup %260 }
 0x2fe   :  { %v213_v26 = vmul.f32 %v261_v25, %v259_v22 }
 0x300   :  { %214 = vst.msk [vmem:[%s371_s6] sm:$0xff] %vm201_vm2, %v213_v26 }
 0x301   :  { %223 = vsyncpa [#allocation3], 1 }

</bundles_post_ra>
